<compile_context>
chip_gen: v5e
topology: v5e:2x2
jax: 0.10.0
libtpu: 0.0.40
codegen_flags: <defaults>
</compile_context>

<pallas_src>
import jax
import jax.numpy as jnp
from jax.experimental import pallas as pl
from jax.experimental.pallas import tpu as pltpu


_MAX_TILE_ROWS = 1024                     # rows per grid step (multiple of 8)
_VMEM_BUDGET_BYTES = 12 * 1024 * 1024     # headroom under v5e's 16 MiB scoped default


def _classifier_kernel(x_ref, w_ref, b_ref, o_ref):
    # x_ref: (TILE_N, H)    f32 VMEM block (streamed, double-buffered)
    # w_ref: (1, H)         f32 VMEM block (constant index_map -> resident)
    # b_ref: (1, 1)         f32 SMEM scalar
    # o_ref: (1, 1, TILE_N) f32 VMEM block (lane-dense output row)
    x = x_ref[...]
    w = w_ref[...]
    # scores_row[0, n] = sum_h w[0, h] * x[n, h]   (w @ x^T, contraction over H)
    z = jax.lax.dot_general(
        w, x,
        dimension_numbers=(((1,), (1,)), ((), ())),
        preferred_element_type=jnp.float32,
    )                                               # (1, TILE_N), lane-dense
    z = z + b_ref[0, 0]
    scores = 1.0 / (1.0 + jnp.exp(-z))              # exact sigmoid (EUP exp)
    o_ref[...] = scores.reshape(1, 1, scores.shape[-1])


def _round_up(x, m):
    return (x + m - 1) // m * m


def classifier_forward(x, weight, bias):
    """x: (B, S, H) f32, weight: (1, H) f32, bias: (1,) f32 -> (B, S) f32."""
    B, S, H = x.shape
    N = B * S

    # Biggest row tile that keeps 2 double-buffered x blocks inside the VMEM budget.
    rows_by_vmem = max(1, _VMEM_BUDGET_BYTES // (2 * H * 4))
    tile_n = max(8, (min(_MAX_TILE_ROWS, rows_by_vmem) // 8) * 8)
    tile_n = min(tile_n, _round_up(N, 8))

    n_pad = _round_up(N, tile_n)
    num_blocks = n_pad // tile_n

    x2 = x.reshape(N, H)
    if n_pad != N:
        x2 = jnp.pad(x2, ((0, n_pad - N), (0, 0)))
    b2 = bias.reshape(1, 1).astype(jnp.float32)

    out = pl.pallas_call(
        _classifier_kernel,
        out_shape=jax.ShapeDtypeStruct((num_blocks, 1, tile_n), jnp.float32),
        grid_spec=pltpu.PrefetchScalarGridSpec(
            num_scalar_prefetch=0,
            grid=(num_blocks,),
            in_specs=[
                pl.BlockSpec((tile_n, H), lambda i: (i, 0)),        # streamed rows
                pl.BlockSpec((1, H), lambda i: (0, 0)),             # resident weight
                pl.BlockSpec(memory_space=pltpu.MemorySpace.SMEM),  # scalar bias
            ],
            out_specs=pl.BlockSpec((1, 1, tile_n), lambda i: (i, 0, 0)),
        ),
        compiler_params=pltpu.CompilerParams(
            # Row blocks are independent: shard across both TensorCores on v7x.
            dimension_semantics=("parallel",),
        ),
    )(x2, weight, b2)

    # Undo padding and reproduce `.squeeze(-1)`.
    return out.reshape(n_pad)[:N].reshape(B, S)


if __name__ == "__main__":
    # Small shapes implied by the module: sentence scores over a batch of docs.
    batch, seq, hidden = 2, 8, 32

    key = jax.random.PRNGKey(0)
    kx, kw, kb = jax.random.split(key, 3)

    x = jax.random.normal(kx, (batch, seq, hidden), dtype=jnp.float32)

    # TODO(synk): original module loads weights from '../l_w.pt'; deterministic
    # PyTorch-Linear-style uniform init is used instead.
    bound = 1.0 / (hidden ** 0.5)
    weight = jax.random.uniform(kw, (1, hidden), dtype=jnp.float32,
                                minval=-bound, maxval=bound)
    bias = jax.random.uniform(kb, (1,), dtype=jnp.float32,
                              minval=-bound, maxval=bound)

    fwd = jax.jit(classifier_forward)
    sent_scores = jax.block_until_ready(fwd(x, weight, bias))

    # Pure-JAX reference.
    ref = jax.nn.sigmoid(jnp.einsum("bsh,h->bs", x, weight[0]) + bias[0])
    assert sent_scores.shape == (batch, seq)
    assert jnp.allclose(sent_scores, ref, atol=1e-5), "mismatch vs reference"

    print("KERNEL_OK")
</pallas_src>

<mosaic_0001>
module attributes {stable_mosaic.version = 11 : i64} {
  func.func @_classifier_kernel(%arg0: i32, %arg1: memref<16x32xf32, #tpu.memory_space<vmem>>, %arg2: memref<1x32xf32, #tpu.memory_space<vmem>>, %arg3: memref<1x1xf32, #tpu.memory_space<smem>>, %arg4: memref<1x1x16xf32, #tpu.memory_space<vmem>>) attributes {dimension_semantics = [#tpu.dimension_semantics<parallel>], iteration_bounds = array<i64: 1>, scalar_prefetch = 0 : i64, scratch_operands = 0 : i64, tpu.core_type = #tpu.core_type<tc>, window_params = [{transform_indices = @transform_0, window_bounds = array<i64: 16, 32>}, {pipeline_mode = #tpu.pipeline_mode<synchronous>, transform_indices = @transform_1, window_bounds = array<i64: 1, 32>}, {transform_indices = @transform_2, window_bounds = array<i64: 1, 1>}, {transform_indices = @transform_3, window_bounds = array<i64: 1, 1, 16>}]} {
    %c0 = arith.constant 0 : index
    %c0_0 = arith.constant 0 : index
    %0 = vector.load %arg1[%c0, %c0_0] : memref<16x32xf32, #tpu.memory_space<vmem>>, vector<16x32xf32>
    %c0_1 = arith.constant 0 : index
    %c0_2 = arith.constant 0 : index
    %1 = vector.load %arg2[%c0_1, %c0_2] : memref<1x32xf32, #tpu.memory_space<vmem>>, vector<1x32xf32>
    %cst = arith.constant dense<0.000000e+00> : vector<1x16xf32>
    %2 = tpu.matmul %1, %0, %cst {dimension_numbers = #tpu.dot_dimension_numbers<[1], [1], [0], [0], [0, 0, 1, 0], [], []>} : vector<1x32xf32>, vector<16x32xf32>, vector<1x16xf32> -> vector<1x16xf32>
    %c0_3 = arith.constant 0 : index
    %c0_4 = arith.constant 0 : index
    %3 = memref.load %arg3[%c0_3, %c0_4] : memref<1x1xf32, #tpu.memory_space<smem>>
    %4 = vector.broadcast %3 : f32 to vector<1x16xf32>
    %5 = arith.addf %2, %4 : vector<1x16xf32>
    %cst_5 = arith.constant 0.000000e+00 : f32
    %6 = vector.broadcast %cst_5 : f32 to vector<1x16xf32>
    %7 = arith.subf %6, %5 : vector<1x16xf32>
    %8 = math.exp %7 : vector<1x16xf32>
    %cst_6 = arith.constant 1.000000e+00 : f32
    %9 = vector.broadcast %cst_6 : f32 to vector<1x16xf32>
    %10 = arith.addf %9, %8 : vector<1x16xf32>
    %cst_7 = arith.constant 1.000000e+00 : f32
    %11 = vector.broadcast %cst_7 : f32 to vector<1x16xf32>
    %12 = arith.divf %11, %10 : vector<1x16xf32>
    %13 = vector.shape_cast %12 : vector<1x16xf32> to vector<1x1x16xf32>
    %c0_8 = arith.constant 0 : index
    %c0_9 = arith.constant 0 : index
    %c0_10 = arith.constant 0 : index
    %14 = vector.load %arg4[%c0_8, %c0_9, %c0_10] : memref<1x1x16xf32, #tpu.memory_space<vmem>>, vector<1x1x16xf32>
    tpu.vector_store %arg4[%c0_8, %c0_9, %c0_10], %13 {strides = array<i32>} : memref<1x1x16xf32, #tpu.memory_space<vmem>>, vector<1x1x16xf32>,
    return
  }
  func.func @transform_0(%arg0: i32) -> (i32, i32) {
    %c0_i32 = arith.constant 0 : i32
    %c0_i32_0 = arith.constant 0 : i32
    return %arg0, %c0_i32 : i32, i32
  }
  func.func @transform_1(%arg0: i32) -> (i32, i32) {
    %c0_i32 = arith.constant 0 : i32
    %c0_i32_0 = arith.constant 0 : i32
    %c0_i32_1 = arith.constant 0 : i32
    return %c0_i32, %c0_i32_0 : i32, i32
  }
  func.func @transform_2(%arg0: i32) -> (i32, i32) {
    %c0_i32 = arith.constant 0 : i32
    %c0_i32_0 = arith.constant 0 : i32
    %c0_i32_1 = arith.constant 0 : i32
    return %c0_i32, %c0_i32_0 : i32, i32
  }
  func.func @transform_3(%arg0: i32) -> (i32, i32, i32) {
    %c0_i32 = arith.constant 0 : i32
    %c0_i32_0 = arith.constant 0 : i32
    %c0_i32_1 = arith.constant 0 : i32
    return %arg0, %c0_i32, %c0_i32_0 : i32, i32, i32
  }
}

</mosaic_0001>

<bundles_post_ra>
// kernel: classifier_forward.1
= control target key start
LH: loop header
LB: loop body
LE: loop exit
PB: predicated region body
PF: predicated region fallthrough
CT: control target
= control target key end

     0   :  { %9 = vsyncpa [#allocation4], 0  ;;  %s128_s15 = smov [#allocation3]   ;;  %s129_s17 = smov 128   ;;  %s163_s0 = inlined_call_operand.hbm [shape: f32[16,32], index: 0, kind: input, shape index: {}]   ;;  %s164_s1 = inlined_call_operand.vmem [shape: f32[1,32], index: 1, kind: input, shape index: {}]   ;;  %s165_s2 = inlined_call_operand.<no memory space> [shape: f32[1,1], index: 2, kind: input, shape index: {}]   ;;  %s166_s3 = inlined_call_operand.vmem [shape: f32[1,1,16], index: 3, kind: output, shape index: {}]  }
   0x1   :  { %s14_s14 = sshll.u32 %s163_s0, 4  ;;  %s16_s16 = sshll.u32 %s128_s15, 4  ;;  %s15_s14 = int_to_ptr.hbm [resolvable:$true] %s14_s14  ;;  %s17_s16 = int_to_ptr.vmem [resolvable:$true] %s16_s16 }
   0x2   :  { %s130_s18 = smov 8  }
   0x3   :  { %22 = dma.hbm_to_vmem [thread:$0]  %s15_s14, 256, %s17_s16, [#allocation4], %s129_s17, %s129_s17, %s130_s18  }
   0x4   :  { %126 = dma.done.wait [#allocation4], 256  }
   0x5   :  { %127 = vsyncadd [#allocation4], 4294967040  ;;  %vm36_vm0 = vcmask 261120   ;;  %v32_v0 = vld [vmem:[#allocation3 + $0x8] sm:$0xff]  ;;  %v31_v1 = vld [vmem:[#allocation3] sm:$0xff]  ;;  %v35_v3 = vstv %s165_s2  ;;  %vm85_vm4 = vcmask 122880  }
   0x6   :  { %92 = vmatpush.xpose.msk.msra.mxu0 %vm36_vm0, %v32_v0  ;;  %v33_v2 = vld [vmem:[%s164_s1] sm:$0x1] }
   0xa   :  { %93 = vmatpush.xpose.msk.msra.mxu0 %vm36_vm0, %v31_v1 }
   0xd   :  { %94 = vmatmul.msk.f32.vlgmr.msra.gmra.mxu0 %vm36_vm0, %v33_v2 }
  0x8a   :  { %v63_v4 = vpop.f32.mrf.mxu0 }
  0x8b   :  { %v64_v5 = vadd.f32 %v63_v4, %v35_v3 }
  0x8d   :  { %v66_v6 = vsub.f32 0.0, %v64_v5 }
  0x8f   :  { %v67_v7 = vmul.f32 1.442695, %v66_v6 }
  0x91   :  { %98 = vpow2.f32 %v67_v7 }
  0x97   :  { %v99_v8 = vpop.eup %98 }
  0x98   :  { %v69_v9 = vadd.f32 1.0, %v99_v8 }
  0x9a   :  { %100 = vrcp.f32 %v69_v9  ;;  %v81_v13 = vand.u32 2147483648, %v69_v9  ;;  %v79_v15 = vand.u32 2147483647, %v69_v9  ;;  %vm75_vm2 = vweird.f32 %v69_v9 }
  0x9c   :  { %v82_v17 = vor.u32 1.1754944e-38, %v81_v13  ;;  %vm80_vm5 = vcmp.eq.f32.partialorder %v79_v15, 8.507059e+37 }
  0xa0   :  { %v101_v10 = vpop.eup %100 }
  0xa1   :  { %v71_v11 = vmul.f32 %v101_v10, %v69_v9  ;;  %vm76_vm1 = vweird.f32 %v101_v10 }
  0xa2   :  { %vm77_vm3 = vmor %vm75_vm2, %vm76_vm1 }
  0xa3   :  { %v72_v12 = vsub.f32 1.0, %v71_v11 }
  0xa5   :  { %v73_v14 = vmul.f32 %v101_v10, %v72_v12 }
  0xa7   :  { %v74_v16 = vadd.f32 %v101_v10, %v73_v14 }
  0xa9   :  { %v78_v18 = vsel %vm77_vm3, %v101_v10, %v74_v16 }
  0xaa   :  { %v83_v19 = vsel %vm80_vm5, %v82_v17, %v78_v18 }
  0xab   :  { %86 = vst.msk [vmem:[%s166_s3] sm:$0x1] %vm85_vm4, %v83_v19 }
  0xac   :  { %91 = vsyncpa [#allocation4], 1 }

</bundles_post_ra>
